<compile_context>
chip_gen: v6e
topology: v6e:2x2x1
jax: 0.10.0
libtpu: 0.0.40
codegen_flags: <defaults>
</compile_context>

<pallas_src>
import functools

import jax
import jax.numpy as jnp
from jax.experimental import pallas as pl
from jax.experimental.pallas import tpu as pltpu


def _mlp_softmax_kernel(x_ref, w1_ref, b1_ref, w2_ref, b2_ref, w3_ref, b3_ref,
                        probs_ref):
    f32 = jnp.float32
    bf16 = jnp.bfloat16
    # hidden layer 1: tanh(x @ W1 + b1)   (bf16 MXU operands, f32 accumulate)
    x = x_ref[...]                                             # already bf16
    h1 = jnp.tanh(jnp.dot(x, w1_ref[...],
                          preferred_element_type=f32) + b1_ref[...])
    # hidden layer 2: tanh(h1 @ W2 + b2)
    h2 = jnp.tanh(jnp.dot(h1.astype(bf16), w2_ref[...],
                          preferred_element_type=f32) + b2_ref[...])
    # output layer (no nonlinearity): logits = h2 @ W3 + b3   (act_dim lanes)
    logits = jnp.dot(h2.astype(bf16), w3_ref[...],
                     preferred_element_type=f32) + b3_ref[...]
    # numerically stable softmax over the action dim; exact normalization so
    # every row sums to 1 (required by downstream Categorical).
    m = jnp.max(logits, axis=1, keepdims=True)
    e = jnp.exp(logits - m)
    denom = jnp.sum(e, axis=1, keepdims=True)
    probs_ref[...] = e / denom


def prepare_params(w1, b1, w2, b2, w3, b3):
    """Cast weights to bf16 (MXU operands), reshape biases to (1, N) f32."""
    return {
        "w1": w1.astype(jnp.bfloat16),
        "b1": jnp.asarray(b1, jnp.float32).reshape(1, -1),
        "w2": w2.astype(jnp.bfloat16),
        "b2": jnp.asarray(b2, jnp.float32).reshape(1, -1),
        "w3": w3.astype(jnp.bfloat16),
        "b3": jnp.asarray(b3, jnp.float32).reshape(1, -1),
    }


def _round_up(x, m):
    return ((x + m - 1) // m) * m


@functools.partial(jax.jit, static_argnames=("act_dim", "tb"))
def categorical_mlp_policy_forward(x, params, *, act_dim, tb=1024):
    """Returns (probs, info); probs parameterize Categorical(probs)."""
    batch, obs_dim = x.shape
    h1_dim = params["w1"].shape[1]
    h2_dim = params["w2"].shape[1]
    assert params["w3"].shape[1] == act_dim

    # Batch tile: multiple of 16 (bf16 sublane packing).  For tiny batches the
    # tile collapses to the whole (padded) batch -> single grid step, no pipeline.
    tb_eff = max(16, (int(tb) // 16) * 16)
    tb_eff = min(tb_eff, _round_up(batch, 16))
    padded_b = _round_up(batch, tb_eff)
    grid = (padded_b // tb_eff,)

    # Feed the kernel bf16 observations: halves the input DMA stream and removes
    # the per-element cast (the MXU consumes bf16 either way).
    x_in = x.astype(jnp.bfloat16)
    if padded_b != batch:
        x_in = jnp.pad(x_in, ((0, padded_b - batch), (0, 0)))

    weight_bytes = (obs_dim * h1_dim + h1_dim * h2_dim + h2_dim * act_dim) * 2 \
                   + (h1_dim + h2_dim + act_dim) * 4
    cost = pl.CostEstimate(
        flops=2 * padded_b * (obs_dim * h1_dim + h1_dim * h2_dim + h2_dim * act_dim),
        transcendentals=padded_b * (h1_dim + h2_dim + act_dim),
        bytes_accessed=padded_b * obs_dim * 2          # bf16 obs in
                       + padded_b * act_dim * 4        # f32 probs out
                       + weight_bytes,
    )

    probs_padded = pl.pallas_call(
        _mlp_softmax_kernel,
        out_shape=jax.ShapeDtypeStruct((padded_b, act_dim), jnp.float32),
        grid=grid,
        in_specs=[
            pl.BlockSpec((tb_eff, obs_dim), lambda i: (i, 0)),      # x: batch-tiled
            # Weights/biases: constant block index -> fetched once, stay resident
            # in VMEM across all grid steps (no per-step re-DMA).
            pl.BlockSpec(params["w1"].shape, lambda i: (0, 0)),
            pl.BlockSpec(params["b1"].shape, lambda i: (0, 0)),
            pl.BlockSpec(params["w2"].shape, lambda i: (0, 0)),
            pl.BlockSpec(params["b2"].shape, lambda i: (0, 0)),
            pl.BlockSpec(params["w3"].shape, lambda i: (0, 0)),
            pl.BlockSpec(params["b3"].shape, lambda i: (0, 0)),
        ],
        # act_dim-wide output: contiguous full-width HBM slab per tile, 16x less
        # writeback than a 128-lane padded f32 output.
        out_specs=pl.BlockSpec((tb_eff, act_dim), lambda i: (i, 0)),
        compiler_params=pltpu.CompilerParams(
            dimension_semantics=("parallel",),         # dual-TC sharding on v7x
            vmem_limit_bytes=32 * 1024 * 1024,         # safe on v5e/v6e/v7x
        ),
        cost_estimate=cost,
    )(x_in, params["w1"], params["b1"], params["w2"], params["b2"],
      params["w3"], params["b3"])

    probs = probs_padded[:batch]

    # torch.distributions.Categorical.mean / .variance are NaN by definition;
    # reproduce that exactly for the info dict (glue, not kernel work).
    # TODO(synk): fuse dist.sample() (Gumbel-max) / log_prob / entropy into this
    # kernel to avoid the probs HBM round trip in a full RL step.
    nan_vec = jnp.full((batch,), jnp.nan, dtype=jnp.float32)
    info = {"mean": nan_vec, "log_std": jnp.log(jnp.sqrt(nan_vec))}
    return probs, info


def _xavier_uniform(key, fan_in, fan_out):
    # matches torch.nn.init.xavier_uniform_ (gain=1)
    limit = jnp.sqrt(6.0 / (fan_in + fan_out))
    return jax.random.uniform(key, (fan_in, fan_out), jnp.float32,
                              minval=-limit, maxval=limit)


if __name__ == "__main__":
    obs_dim = 16     # env_spec.observation_space.flat_dim
    act_dim = 8      # env_spec.action_space.flat_dim
    hidden = (32, 32)

    key = jax.random.PRNGKey(0)
    k_x, k_w1, k_w2, k_w3 = jax.random.split(key, 4)

    # Deterministic parameter init mirroring the module's __init__:
    # hidden_w_init = xavier_uniform, hidden_b_init = zeros,
    # output_w_init = xavier_uniform, output_b_init = zeros.
    w1 = _xavier_uniform(k_w1, obs_dim, hidden[0])
    b1 = jnp.zeros((hidden[0],), jnp.float32)
    w2 = _xavier_uniform(k_w2, hidden[0], hidden[1])
    b2 = jnp.zeros((hidden[1],), jnp.float32)
    w3 = _xavier_uniform(k_w3, hidden[1], act_dim)
    b3 = jnp.zeros((act_dim,), jnp.float32)
    params = prepare_params(w1, b1, w2, b2, w3, b3)

    def reference(xv):
        # Pure-JAX reference with the same bf16-operand / f32-accumulate matmuls.
        bf16, f32 = jnp.bfloat16, jnp.float32
        xb = xv.astype(bf16)
        h1 = jnp.tanh(jnp.dot(xb, w1.astype(bf16), preferred_element_type=f32) + b1)
        h2 = jnp.tanh(jnp.dot(h1.astype(bf16), w2.astype(bf16),
                              preferred_element_type=f32) + b2)
        logits = jnp.dot(h2.astype(bf16), w3.astype(bf16),
                         preferred_element_type=f32) + b3
        return jax.nn.softmax(logits, axis=1)

    # Two configs: (a) ragged small batch -> single grid step (tile collapses to
    # the padded batch); (b) larger batch with tb=256 -> 4 grid steps, exercises
    # the batch-tiled / megacore-parallel pipeline path.
    for batch, tb in ((250, 1024), (1024, 256)):
        x = jax.random.normal(jax.random.fold_in(k_x, batch),
                              (batch, obs_dim), jnp.float32)
        probs, info = categorical_mlp_policy_forward(x, params, act_dim=act_dim, tb=tb)
        probs = jax.block_until_ready(probs)
        ref = reference(x)

        assert probs.shape == (batch, act_dim)
        assert jnp.allclose(probs, ref, atol=2e-3, rtol=2e-3), "mismatch vs reference"
        assert jnp.allclose(jnp.sum(probs, axis=1), 1.0, atol=1e-5), "rows must sum to 1"
        assert bool(jnp.all(jnp.isnan(info["mean"])))
        assert bool(jnp.all(jnp.isnan(info["log_std"])))

    print("KERNEL_OK")
</pallas_src>

<mosaic_0001>
module attributes {stable_mosaic.version = 11 : i64} {
  func.func @_mlp_softmax_kernel(%arg0: i32, %arg1: memref<256x16xbf16, #tpu.memory_space<vmem>>, %arg2: memref<16x32xbf16, #tpu.memory_space<vmem>>, %arg3: memref<1x32xf32, #tpu.memory_space<vmem>>, %arg4: memref<32x32xbf16, #tpu.memory_space<vmem>>, %arg5: memref<1x32xf32, #tpu.memory_space<vmem>>, %arg6: memref<32x8xbf16, #tpu.memory_space<vmem>>, %arg7: memref<1x8xf32, #tpu.memory_space<vmem>>, %arg8: memref<256x8xf32, #tpu.memory_space<vmem>>) attributes {dimension_semantics = [#tpu.dimension_semantics<parallel>], iteration_bounds = array<i64: 1>, scalar_prefetch = 0 : i64, scratch_operands = 0 : i64, tpu.core_type = #tpu.core_type<tc>, window_params = [{transform_indices = @transform_0, window_bounds = array<i64: 256, 16>}, {pipeline_mode = #tpu.pipeline_mode<synchronous>, transform_indices = @transform_1, window_bounds = array<i64: 16, 32>}, {pipeline_mode = #tpu.pipeline_mode<synchronous>, transform_indices = @transform_2, window_bounds = array<i64: 1, 32>}, {pipeline_mode = #tpu.pipeline_mode<synchronous>, transform_indices = @transform_3, window_bounds = array<i64: 32, 32>}, {pipeline_mode = #tpu.pipeline_mode<synchronous>, transform_indices = @transform_4, window_bounds = array<i64: 1, 32>}, {pipeline_mode = #tpu.pipeline_mode<synchronous>, transform_indices = @transform_5, window_bounds = array<i64: 32, 8>}, {pipeline_mode = #tpu.pipeline_mode<synchronous>, transform_indices = @transform_6, window_bounds = array<i64: 1, 8>}, {transform_indices = @transform_7, window_bounds = array<i64: 256, 8>}]} {
    %c0 = arith.constant 0 : index
    %c0_0 = arith.constant 0 : index
    %0 = vector.load %arg1[%c0, %c0_0] : memref<256x16xbf16, #tpu.memory_space<vmem>>, vector<256x16xbf16>
    %c0_1 = arith.constant 0 : index
    %c0_2 = arith.constant 0 : index
    %1 = vector.load %arg2[%c0_1, %c0_2] : memref<16x32xbf16, #tpu.memory_space<vmem>>, vector<16x32xbf16>
    %cst = arith.constant dense<0.000000e+00> : vector<256x32xf32>
    %2 = tpu.matmul %0, %1, %cst {dimension_numbers = #tpu.dot_dimension_numbers<[1], [0], [0], [1], [0, 0, 1, 1], [], []>} : vector<256x16xbf16>, vector<16x32xbf16>, vector<256x32xf32> -> vector<256x32xf32>
    %c0_3 = arith.constant 0 : index
    %c0_4 = arith.constant 0 : index
    %3 = vector.load %arg3[%c0_3, %c0_4] : memref<1x32xf32, #tpu.memory_space<vmem>>, vector<1x32xf32>
    %4 = vector.broadcast %3 : vector<1x32xf32> to vector<256x32xf32>
    %5 = arith.addf %2, %4 : vector<256x32xf32>
    %6 = math.tanh %5 : vector<256x32xf32>
    %7 = arith.truncf %6 : vector<256x32xf32> to vector<256x32xbf16>
    %c0_5 = arith.constant 0 : index
    %c0_6 = arith.constant 0 : index
    %8 = vector.load %arg4[%c0_5, %c0_6] : memref<32x32xbf16, #tpu.memory_space<vmem>>, vector<32x32xbf16>
    %cst_7 = arith.constant dense<0.000000e+00> : vector<256x32xf32>
    %9 = tpu.matmul %7, %8, %cst_7 {dimension_numbers = #tpu.dot_dimension_numbers<[1], [0], [0], [1], [0, 0, 1, 1], [], []>} : vector<256x32xbf16>, vector<32x32xbf16>, vector<256x32xf32> -> vector<256x32xf32>
    %c0_8 = arith.constant 0 : index
    %c0_9 = arith.constant 0 : index
    %10 = vector.load %arg5[%c0_8, %c0_9] : memref<1x32xf32, #tpu.memory_space<vmem>>, vector<1x32xf32>
    %11 = vector.broadcast %10 : vector<1x32xf32> to vector<256x32xf32>
    %12 = arith.addf %9, %11 : vector<256x32xf32>
    %13 = math.tanh %12 : vector<256x32xf32>
    %14 = arith.truncf %13 : vector<256x32xf32> to vector<256x32xbf16>
    %c0_10 = arith.constant 0 : index
    %c0_11 = arith.constant 0 : index
    %15 = vector.load %arg6[%c0_10, %c0_11] : memref<32x8xbf16, #tpu.memory_space<vmem>>, vector<32x8xbf16>
    %cst_12 = arith.constant dense<0.000000e+00> : vector<256x8xf32>
    %16 = tpu.matmul %14, %15, %cst_12 {dimension_numbers = #tpu.dot_dimension_numbers<[1], [0], [0], [1], [0, 0, 1, 1], [], []>} : vector<256x32xbf16>, vector<32x8xbf16>, vector<256x8xf32> -> vector<256x8xf32>
    %c0_13 = arith.constant 0 : index
    %c0_14 = arith.constant 0 : index
    %17 = vector.load %arg7[%c0_13, %c0_14] : memref<1x8xf32, #tpu.memory_space<vmem>>, vector<1x8xf32>
    %18 = vector.broadcast %17 : vector<1x8xf32> to vector<256x8xf32>
    %19 = arith.addf %16, %18 : vector<256x8xf32>
    %cst_15 = arith.constant dense<0xFF800000> : vector<256xf32>
    %20 = vector.multi_reduction <maximumf>, %19, %cst_15 [1] : vector<256x8xf32> to vector<256xf32>
    %21 = vector.shape_cast %20 : vector<256xf32> to vector<256x1xf32>
    %22 = vector.broadcast %21 : vector<256x1xf32> to vector<256x8xf32>
    %23 = arith.subf %19, %22 : vector<256x8xf32>
    %24 = math.exp %23 : vector<256x8xf32>
    %cst_16 = arith.constant dense<0.000000e+00> : vector<256xf32>
    %25 = vector.multi_reduction <add>, %24, %cst_16 [1] : vector<256x8xf32> to vector<256xf32>
    %26 = vector.shape_cast %25 : vector<256xf32> to vector<256x1xf32>
    %27 = vector.broadcast %26 : vector<256x1xf32> to vector<256x8xf32>
    %28 = arith.divf %24, %27 : vector<256x8xf32>
    %c0_17 = arith.constant 0 : index
    %c0_18 = arith.constant 0 : index
    %29 = vector.load %arg8[%c0_17, %c0_18] : memref<256x8xf32, #tpu.memory_space<vmem>>, vector<256x8xf32>
    tpu.vector_store %arg8[%c0_17, %c0_18], %28 {strides = array<i32>} : memref<256x8xf32, #tpu.memory_space<vmem>>, vector<256x8xf32>,
    return
  }
  func.func @transform_0(%arg0: i32) -> (i32, i32) {
    %c0_i32 = arith.constant 0 : i32
    %c0_i32_0 = arith.constant 0 : i32
    return %arg0, %c0_i32 : i32, i32
  }
  func.func @transform_1(%arg0: i32) -> (i32, i32) {
    %c0_i32 = arith.constant 0 : i32
    %c0_i32_0 = arith.constant 0 : i32
    %c0_i32_1 = arith.constant 0 : i32
    return %c0_i32, %c0_i32_0 : i32, i32
  }
  func.func @transform_2(%arg0: i32) -> (i32, i32) {
    %c0_i32 = arith.constant 0 : i32
    %c0_i32_0 = arith.constant 0 : i32
    %c0_i32_1 = arith.constant 0 : i32
    return %c0_i32, %c0_i32_0 : i32, i32
  }
  func.func @transform_3(%arg0: i32) -> (i32, i32) {
    %c0_i32 = arith.constant 0 : i32
    %c0_i32_0 = arith.constant 0 : i32
    %c0_i32_1 = arith.constant 0 : i32
    return %c0_i32, %c0_i32_0 : i32, i32
  }
  func.func @transform_4(%arg0: i32) -> (i32, i32) {
    %c0_i32 = arith.constant 0 : i32
    %c0_i32_0 = arith.constant 0 : i32
    %c0_i32_1 = arith.constant 0 : i32
    return %c0_i32, %c0_i32_0 : i32, i32
  }
  func.func @transform_5(%arg0: i32) -> (i32, i32) {
    %c0_i32 = arith.constant 0 : i32
    %c0_i32_0 = arith.constant 0 : i32
    %c0_i32_1 = arith.constant 0 : i32
    return %c0_i32, %c0_i32_0 : i32, i32
  }
  func.func @transform_6(%arg0: i32) -> (i32, i32) {
    %c0_i32 = arith.constant 0 : i32
    %c0_i32_0 = arith.constant 0 : i32
    %c0_i32_1 = arith.constant 0 : i32
    return %c0_i32, %c0_i32_0 : i32, i32
  }
  func.func @transform_7(%arg0: i32) -> (i32, i32) {
    %c0_i32 = arith.constant 0 : i32
    %c0_i32_0 = arith.constant 0 : i32
    return %arg0, %c0_i32 : i32, i32
  }
}

</mosaic_0001>

<bundles_post_ra>
// kernel: categorical_mlp_policy_forward.1
= control target key start
LH: loop header
LB: loop body
LE: loop exit
PB: predicated region body
PF: predicated region fallthrough
CT: control target
= control target key end

     0   :  { %vm154_vm0 = vcmask 130048   ;;  %vm435_vm1 = vcmask 261120   ;;  %vm925_vm2 = vcmask 64512   ;;  %s2552_s1 = inlined_call_operand.vmem [shape: bf16[16,32], index: 1, kind: input, shape index: {}]   ;;  %s2553_s0 = inlined_call_operand.vmem [shape: bf16[256,16], index: 0, kind: input, shape index: {}]   ;;  %s2554_s3 = inlined_call_operand.vmem [shape: bf16[32,32], index: 3, kind: input, shape index: {}]   ;;  %s2555_s5 = inlined_call_operand.vmem [shape: bf16[32,8], index: 5, kind: input, shape index: {}]   ;;  %s2556_s2 = inlined_call_operand.vmem [shape: f32[1,32], index: 2, kind: input, shape index: {}]   ;;  %s2557_s4 = inlined_call_operand.vmem [shape: f32[1,32], index: 4, kind: input, shape index: {}]   ;;  %s2558_s6 = inlined_call_operand.vmem [shape: f32[1,8], index: 6, kind: input, shape index: {}]   ;;  %s2559_s7 = inlined_call_operand.vmem [shape: f32[256,8], index: 7, kind: output, shape index: {}]  }
   0x1   :  { %v1547_v0 = vld [vmem:[%s2552_s1] sm:$0xff]   ;;  %v1549_v2 = vld [vmem:[%s2553_s0 + $0x8] sm:$0xff]   ;;  %v1550_v3 = vld [vmem:[%s2553_s0 + $0x10] sm:$0xff]  }
   0x2   :  { %v1548_v1 = vld [vmem:[%s2553_s0] sm:$0xff]   ;;  %1439 = vmatprep.subr.bf16.mxu0 %v1547_v0  ;;  %1545 = vmatprep.subr.bf16.mxu1 %v1547_v0  ;;  %v1551_v4 = vld [vmem:[%s2553_s0 + $0x18] sm:$0xff]   ;;  %v1557_v7 = vld [vmem:[%s2553_s0 + $0x48] sm:$0xff]  }
   0x3   :  { %1440 = vmatpush3.bf16.msra.mxu0 %v1547_v0  ;;  %1441 = vmatprep.mubr.msk.bf16.mxu0 %vm154_vm0, %v1548_v1  ;;  %v1552_v5 = vld [vmem:[%s2553_s0 + $0x20] sm:$0xff]   ;;  %v1558_v8 = vld [vmem:[%s2553_s0 + $0x50] sm:$0xff]   ;;  %v1559_v9 = vld [vmem:[%s2553_s0 + $0x58] sm:$0xff]  }
   0x4   :  { %1546 = vmatpush3.bf16.msra.mxu1 %v1547_v0  ;;  %v1556_v6 = vld [vmem:[%s2553_s0 + $0x40] sm:$0xff]   ;;  %v1564_v11 = vld [vmem:[%s2554_s3 + $0x8] sm:$0xff]   ;;  %v1554_v13 = vld [vmem:[%s2553_s0 + $0x30] sm:$0xff]  }
   0x5   :  { %1457 = vmatprep.mubr.msk.bf16.mxu1 %vm154_vm0, %v1556_v6  ;;  %v1560_v10 = vld [vmem:[%s2553_s0 + $0x60] sm:$0xff]   ;;  %v1553_v12 = vld [vmem:[%s2553_s0 + $0x28] sm:$0xff]   ;;  %1473 = vmatprep.subr.bf16.mxu1 %v1564_v11  ;;  %v1562_v15 = vld [vmem:[%s2553_s0 + $0x70] sm:$0xff]  }
   0x6   :  { %1442 = vmatmul.mubr.msk.bf16.vlgmr.msra.gmra.mxu0 %vm154_vm0, %v1549_v2  ;;  %v1561_v14 = vld [vmem:[%s2553_s0 + $0x68] sm:$0xff]   ;;  %v1555_v16 = vld [vmem:[%s2553_s0 + $0x38] sm:$0xff]   ;;  %v1565_v18 = vld [vmem:[%s2554_s3] sm:$0xff]  }
   0x7   :  { %1445 = vmatprep.mubr.msk.bf16.mxu0 %vm154_vm0, %v1550_v3  ;;  %1458 = vmatmul.mubr.msk.bf16.vlgmr.msra.gmra.mxu1 %vm154_vm0, %v1557_v7  ;;  %v1563_v17 = vld [vmem:[%s2553_s0 + $0x78] sm:$0xff]   ;;  %v1566_v19 = vld [vmem:[%s2555_s5 + $0x8] sm:$0xff]   ;;  %v1943_v21 = vld [vmem:[%s2556_s2] ss:$0 sm:$0xff] }
   0x8   :  { %1461 = vmatprep.mubr.msk.bf16.mxu1 %vm154_vm0, %v1558_v8  ;;  %1474 = vmatpush3.bf16.msra.mxu1 %v1564_v11 }
   0x9   :  { %1475 = vmatprep.subr.bf16.mxu1 %v1565_v18  ;;  %1509 = vmatprep.subr.bf16.mxu0 %v1566_v19 }
   0xa   :  { %1510 = vmatpush3.bf16.msra.mxu0 %v1566_v19 }
   0xc   :  { %1476 = vmatpush3.bf16.msra.mxu1 %v1565_v18 }
   0xe   :  { %1446 = vmatmul.mubr.msk.bf16.gmra.mxu0 %vm154_vm0, %v1551_v4 }
   0xf   :  { %1449 = vmatprep.mubr.msk.bf16.mxu0 %vm154_vm0, %v1552_v5  ;;  %1462 = vmatmul.mubr.msk.bf16.gmra.mxu1 %vm154_vm0, %v1559_v9 }
  0x10   :  { %1465 = vmatprep.mubr.msk.bf16.mxu1 %vm154_vm0, %v1560_v10 }
  0x16   :  { %1450 = vmatmul.mubr.msk.bf16.gmra.mxu0 %vm154_vm0, %v1553_v12 }
  0x17   :  { %1453 = vmatprep.mubr.msk.bf16.mxu0 %vm154_vm0, %v1554_v13  ;;  %1466 = vmatmul.mubr.msk.bf16.gmra.mxu1 %vm154_vm0, %v1561_v14 }
  0x18   :  { %1469 = vmatprep.mubr.msk.bf16.mxu1 %vm154_vm0, %v1562_v15 }
  0x1e   :  { %1454 = vmatmul.mubr.msk.bf16.gmra.mxu0 %vm154_vm0, %v1555_v16 }
  0x1f   :  { %1470 = vmatmul.mubr.msk.bf16.gmra.mxu1 %vm154_vm0, %v1563_v17 }
  0xc6   :  { %v1443_v20 = vpop.f32.mrf.mxu0 }
  0xc7   :  { %v246_v26 = vadd.f32 %v1443_v20, %v1943_v21  ;;  %v1948_v28 = vpop.f32.mrf.mxu1 }
  0xc8   :  { %v237_v22 = vpop.f32.mrf.mxu0  ;;  %v310_v15 = vadd.f32 %v1948_v28, %v1943_v21 }
  0xc9   :  { %v238_v23 = vadd.f32 %v1943_v21, %v237_v22  ;;  %v301_v31 = vpop.f32.mrf.mxu1 }
  0xca   :  { %v1444_v24 = vpop.f32.mrf.mxu0  ;;  %v302_v62 = vadd.f32 %v1943_v21, %v301_v31 }
  0xcb   :  { %v249_v25 = vadd.f32 %v1444_v24, %v1943_v21  ;;  %1568 = vtanh.f32 %v238_v23  ;;  %v1951_v33 = vpop.f32.mrf.mxu1 }
  0xcc   :  { %v240_v27 = vpop.f32.mrf.mxu0  ;;  %v313_v19 = vadd.f32 %v1951_v33, %v1943_v21 }
  0xcd   :  { %v241_v29 = vadd.f32 %v1943_v21, %v240_v27  ;;  %1570 = vtanh.f32 %v249_v25  ;;  %v304_v36 = vpop.f32.mrf.mxu1 }
  0xce   :  { %v1447_v30 = vpop.f32.mrf.mxu0  ;;  %v305_v0 = vadd.f32 %v1943_v21, %v304_v36 }
  0xcf   :  { %1572 = vtanh.f32 %v241_v29  ;;  %v262_v38 = vadd.f32 %v1447_v30, %v1943_v21  ;;  %v1956_v40 = vpop.f32.mrf.mxu1 }
  0xd0   :  { %1574 = vtanh.f32 %v246_v26  ;;  %v253_v32 = vpop.f32.mrf.mxu0  ;;  %v326_v28 = vadd.f32 %v1956_v40, %v1943_v21 }
  0xd1   :  { %v254_v34 = vadd.f32 %v1943_v21, %v253_v32  ;;  %v317_v43 = vpop.f32.mrf.mxu1 }
  0xd2   :  { %v1448_v35 = vpop.f32.mrf.mxu0  ;;  %v318_v16 = vadd.f32 %v1943_v21, %v317_v43 }
  0xd3   :  { %v265_v37 = vadd.f32 %v1448_v35, %v1943_v21  ;;  %1576 = vtanh.f32 %v254_v34  ;;  %v1959_v45 = vpop.f32.mrf.mxu1 }
  0xd4   :  { %v256_v39 = vpop.f32.mrf.mxu0  ;;  %v329_v34 = vadd.f32 %v1959_v45, %v1943_v21 }
  0xd5   :  { %v257_v41 = vadd.f32 %v1943_v21, %v256_v39  ;;  %1578 = vtanh.f32 %v265_v37  ;;  %v320_v49 = vpop.f32.mrf.mxu1 }
  0xd6   :  { %v1451_v42 = vpop.f32.mrf.mxu0  ;;  %v321_v17 = vadd.f32 %v1943_v21, %v320_v49 }
  0xd7   :  { %1580 = vtanh.f32 %v257_v41  ;;  %v278_v53 = vadd.f32 %v1451_v42, %v1943_v21  ;;  %v1964_v55 = vpop.f32.mrf.mxu1 }
  0xd8   :  { %1582 = vtanh.f32 %v262_v38  ;;  %v269_v44 = vpop.f32.mrf.mxu0  ;;  %v1569_v47 = vpop.eup %1568  ;;  %v342_v43 = vadd.f32 %v1964_v55, %v1943_v21 }
  0xd9   :  { %v270_v46 = vadd.f32 %v1943_v21, %v269_v44  ;;  %v333_v61 = vpop.f32.mrf.mxu1 }
  0xda   :  { %v1452_v48 = vpop.f32.mrf.mxu0  ;;  %v1571_v50 = vpop.eup %1570  ;;  %v334_v30 = vadd.f32 %v1943_v21, %v333_v61 }
  0xdb   :  { %v281_v51 = vadd.f32 %v1452_v48, %v1943_v21  ;;  %1584 = vtanh.f32 %v270_v46  ;;  %v1972_v4 = vpop.f32.mrf.mxu1 }
  0xdc   :  { %v1573_v52 = vpop.eup %1572  ;;  %v272_v54 = vpop.f32.mrf.mxu0  ;;  %v345_v49 = vadd.f32 %v1972_v4, %v1943_v21 }
  0xdd   :  { %v1575_v56 = vpop.eup %1574  ;;  %v273_v57 = vadd.f32 %v1943_v21, %v272_v54  ;;  %v396_v58 = vpack.c.bf16 %v1573_v52, %v1569_v47  ;;  %1586 = vtanh.f32 %v281_v51  ;;  %v336_v14 = vpop.f32.mrf.mxu1 }
  0xde   :  { %v397_v59 = vpack.c.bf16 %v1571_v50, %v1575_v56  ;;  %v1455_v60 = vpop.f32.mrf.mxu0  ;;  %v337_v32 = vadd.f32 %v1943_v21, %v336_v14 }
  0xdf   :  { %1588 = vtanh.f32 %v273_v57  ;;  %1477 = vmatprep.mubr.msk.bf16.mxu1 %vm435_vm1, %v396_v58  ;;  %v294_v8 = vadd.f32 %v1455_v60, %v1943_v21  ;;  %v1471_v20 = vpop.f32.mrf.mxu1 }
  0xe0   :  { %1590 = vtanh.f32 %v278_v53  ;;  %v285_v63 = vpop.f32.mrf.mxu0  ;;  %1478 = vmatmul.mubr.msk.bf16.vlgmr.msra.gmra.mxu1 %vm435_vm1, %v397_v59  ;;  %v1577_v2 = vpop.eup %1576  ;;  %v358_v55 = vadd.f32 %v1471_v20, %v1943_v21 }
  0xe1   :  { %v286_v1 = vadd.f32 %v1943_v21, %v285_v63  ;;  %1592 = vtanh.f32 %v302_v62  ;;  %v349_v27 = vpop.f32.mrf.mxu1 }
  0xe2   :  { %v1456_v3 = vpop.f32.mrf.mxu0  ;;  %v1579_v5 = vpop.eup %1578  ;;  %1594 = vtanh.f32 %v305_v0  ;;  %v350_v45 = vadd.f32 %v1943_v21, %v349_v27 }
  0xe3   :  { %v297_v6 = vadd.f32 %v1456_v3, %v1943_v21  ;;  %1596 = vtanh.f32 %v286_v1  ;;  %v1472_v35 = vpop.f32.mrf.mxu1 }
  0xe4   :  { %v1581_v7 = vpop.eup %1580  ;;  %v288_v9 = vpop.f32.mrf.mxu0  ;;  %v361_v57 = vadd.f32 %v1472_v35, %v1943_v21 }
  0xe5   :  { %v1583_v10 = vpop.eup %1582  ;;  %v289_v11 = vadd.f32 %v1943_v21, %v288_v9  ;;  %v398_v12 = vpack.c.bf16 %v1581_v7, %v1577_v2  ;;  %1598 = vtanh.f32 %v297_v6  ;;  %v352_v42 = vpop.f32.mrf.mxu1  ;;  %v2017_v7 = vld [vmem:[%s2557_s4] ss:$0 sm:$0xff] }
  0xe6   :  { %v399_v13 = vpack.c.bf16 %v1579_v5, %v1583_v10  ;;  %v353_v47 = vadd.f32 %v1943_v21, %v352_v42  ;;  %v1567_v5 = vld [vmem:[%s2555_s5] sm:$0xff]  }
  0xe7   :  { %1600 = vtanh.f32 %v289_v11  ;;  %1481 = vmatprep.mubr.msk.bf16.mxu1 %vm435_vm1, %v398_v12  ;;  %1511 = vmatprep.subr.bf16.mxu0 %v1567_v5 }
  0xe8   :  { %1602 = vtanh.f32 %v294_v8  ;;  %1482 = vmatmul.mubr.msk.bf16.gmra.mxu1 %vm435_vm1, %v399_v13  ;;  %v1585_v18 = vpop.eup %1584  ;;  %1512 = vmatpush3.bf16.msra.mxu0 %v1567_v5 }
  0xe9   :  { %1604 = vtanh.f32 %v310_v15 }
  0xea   :  { %v1587_v22 = vpop.eup %1586  ;;  %1606 = vtanh.f32 %v318_v16 }
  0xeb   :  { %1608 = vtanh.f32 %v321_v17 }
  0xec   :  { %v1589_v23 = vpop.eup %1588  ;;  %1610 = vtanh.f32 %v313_v19 }
  0xed   :  { %v1591_v24 = vpop.eup %1590  ;;  %v400_v25 = vpack.c.bf16 %v1589_v23, %v1585_v18  ;;  %1612 = vtanh.f32 %v326_v28 }
  0xee   :  { %v401_v26 = vpack.c.bf16 %v1587_v22, %v1591_v24  ;;  %v1593_v29 = vpop.eup %1592  ;;  %1614 = vtanh.f32 %v334_v30 }
  0xef   :  { %1485 = vmatprep.mubr.msk.bf16.mxu1 %vm435_vm1, %v400_v25  ;;  %v1595_v31 = vpop.eup %1594  ;;  %1616 = vtanh.f32 %v337_v32 }
  0xf0   :  { %1486 = vmatmul.mubr.msk.bf16.gmra.mxu1 %vm435_vm1, %v401_v26  ;;  %v1597_v33 = vpop.eup %1596  ;;  %v404_v40 = vpack.c.bf16 %v1595_v31, %v1593_v29  ;;  %1618 = vtanh.f32 %v329_v34 }
  0xf1   :  { %1620 = vtanh.f32 %v342_v43 }
  0xf2   :  { %v1599_v36 = vpop.eup %1598  ;;  %1622 = vtanh.f32 %v350_v45 }
  0xf3   :  { %1624 = vtanh.f32 %v353_v47 }
  0xf4   :  { %v1601_v37 = vpop.eup %1600  ;;  %1626 = vtanh.f32 %v345_v49 }
  0xf5   :  { %v1603_v38 = vpop.eup %1602  ;;  %v402_v39 = vpack.c.bf16 %v1601_v37, %v1597_v33  ;;  %1628 = vtanh.f32 %v358_v55 }
  0xf6   :  { %v403_v41 = vpack.c.bf16 %v1599_v36, %v1603_v38  ;;  %v1605_v44 = vpop.eup %1604  ;;  %1630 = vtanh.f32 %v361_v57 }
  0xf7   :  { %1489 = vmatprep.mubr.msk.bf16.mxu1 %vm435_vm1, %v402_v39  ;;  %v1607_v46 = vpop.eup %1606 }
  0xf8   :  { %1490 = vmatmul.mubr.msk.bf16.gmra.mxu1 %vm435_vm1, %v403_v41  ;;  %v1609_v48 = vpop.eup %1608 }
  0xf9   :  { %1493 = vmatprep.mubr.msk.bf16.mxu1 %vm435_vm1, %v404_v40  ;;  %v1611_v50 = vpop.eup %1610  ;;  %v406_v51 = vpack.c.bf16 %v1609_v48, %v1607_v46 }
  0xfa   :  { %v405_v52 = vpack.c.bf16 %v1611_v50, %v1605_v44  ;;  %v1613_v53 = vpop.eup %1612 }
  0xfb   :  { %v1615_v54 = vpop.eup %1614 }
  0xfc   :  { %v1617_v56 = vpop.eup %1616 }
  0xfd   :  { %v1619_v58 = vpop.eup %1618  ;;  %v408_v59 = vpack.c.bf16 %v1617_v56, %v1615_v54 }
  0xfe   :  { %v407_v60 = vpack.c.bf16 %v1619_v58, %v1613_v53  ;;  %v1621_v61 = vpop.eup %1620 }
  0xff   :  { %v1623_v62 = vpop.eup %1622 }
 0x100   :  { %1494 = vmatmul.mubr.msk.bf16.gmra.mxu1 %vm435_vm1, %v405_v52  ;;  %v1625_v63 = vpop.eup %1624 }
 0x101   :  { %1497 = vmatprep.mubr.msk.bf16.mxu1 %vm435_vm1, %v406_v51  ;;  %v1627_v0 = vpop.eup %1626  ;;  %v410_v1 = vpack.c.bf16 %v1625_v63, %v1623_v62 }
 0x102   :  { %v409_v2 = vpack.c.bf16 %v1627_v0, %v1621_v61  ;;  %v1629_v21 = vpop.eup %1628 }
 0x103   :  { %v1631_v3 = vpop.eup %1630 }
 0x104   :  { %v411_v4 = vpack.c.bf16 %v1631_v3, %v1629_v21 }
 0x108   :  { %1498 = vmatmul.mubr.msk.bf16.gmra.mxu1 %vm435_vm1, %v407_v60 }
 0x109   :  { %1501 = vmatprep.mubr.msk.bf16.mxu1 %vm435_vm1, %v408_v59 }
 0x110   :  { %1502 = vmatmul.mubr.msk.bf16.gmra.mxu1 %vm435_vm1, %v409_v2 }
 0x111   :  { %1505 = vmatprep.mubr.msk.bf16.mxu1 %vm435_vm1, %v410_v1 }
 0x118   :  { %1506 = vmatmul.mubr.msk.bf16.gmra.mxu1 %vm435_vm1, %v411_v4 }
 0x1a0   :  { %v1479_v6 = vpop.f32.mrf.mxu1 }
 0x1a1   :  { %v527_v12 = vadd.f32 %v1479_v6, %v2017_v7 }
 0x1a2   :  { %v518_v8 = vpop.f32.mrf.mxu1 }
 0x1a3   :  { %v519_v9 = vadd.f32 %v2017_v7, %v518_v8 }
 0x1a4   :  { %v1480_v10 = vpop.f32.mrf.mxu1 }
 0x1a5   :  { %v530_v11 = vadd.f32 %v1480_v10, %v2017_v7  ;;  %1632 = vtanh.f32 %v519_v9 }
 0x1a6   :  { %v521_v13 = vpop.f32.mrf.mxu1 }
 0x1a7   :  { %v522_v14 = vadd.f32 %v2017_v7, %v521_v13  ;;  %1634 = vtanh.f32 %v530_v11 }
 0x1a8   :  { %v1483_v15 = vpop.f32.mrf.mxu1 }
 0x1a9   :  { %1636 = vtanh.f32 %v522_v14  ;;  %v543_v20 = vadd.f32 %v1483_v15, %v2017_v7 }
 0x1aa   :  { %1638 = vtanh.f32 %v527_v12  ;;  %v534_v16 = vpop.f32.mrf.mxu1 }
 0x1ab   :  { %v535_v17 = vadd.f32 %v2017_v7, %v534_v16 }
 0x1ac   :  { %v1484_v18 = vpop.f32.mrf.mxu1 }
 0x1ad   :  { %v546_v19 = vadd.f32 %v1484_v18, %v2017_v7  ;;  %1640 = vtanh.f32 %v535_v17 }
 0x1ae   :  { %v537_v22 = vpop.f32.mrf.mxu1 }
 0x1af   :  { %v538_v23 = vadd.f32 %v2017_v7, %v537_v22  ;;  %1642 = vtanh.f32 %v546_v19 }
 0x1b0   :  { %v1487_v24 = vpop.f32.mrf.mxu1 }
 0x1b1   :  { %1644 = vtanh.f32 %v538_v23  ;;  %v559_v32 = vadd.f32 %v1487_v24, %v2017_v7 }
 0x1b2   :  { %1646 = vtanh.f32 %v543_v20  ;;  %v550_v25 = vpop.f32.mrf.mxu1  ;;  %v1633_v27 = vpop.eup %1632 }
 0x1b3   :  { %v551_v26 = vadd.f32 %v2017_v7, %v550_v25 }
 0x1b4   :  { %v1488_v28 = vpop.f32.mrf.mxu1  ;;  %v1635_v29 = vpop.eup %1634 }
 0x1b5   :  { %v562_v30 = vadd.f32 %v1488_v28, %v2017_v7  ;;  %1648 = vtanh.f32 %v551_v26 }
 0x1b6   :  { %v1637_v31 = vpop.eup %1636  ;;  %v553_v33 = vpop.f32.mrf.mxu1 }
 0x1b7   :  { %v1639_v34 = vpop.eup %1638  ;;  %v554_v35 = vadd.f32 %v2017_v7, %v553_v33  ;;  %v677_v36 = vpack.c.bf16 %v1637_v31, %v1633_v27  ;;  %1650 = vtanh.f32 %v562_v30 }
 0x1b8   :  { %v678_v37 = vpack.c.bf16 %v1635_v29, %v1639_v34  ;;  %v1491_v38 = vpop.f32.mrf.mxu1 }
 0x1b9   :  { %1652 = vtanh.f32 %v554_v35  ;;  %1513 = vmatprep.mubr.msk.bf16.mxu0 %vm435_vm1, %v677_v36  ;;  %v575_v46 = vadd.f32 %v1491_v38, %v2017_v7 }
 0x1ba   :  { %1654 = vtanh.f32 %v559_v32  ;;  %v566_v39 = vpop.f32.mrf.mxu1  ;;  %1514 = vmatmul.mubr.msk.bf16.vlgmr.msra.gmra.mxu0 %vm435_vm1, %v678_v37  ;;  %v1641_v41 = vpop.eup %1640 }
 0x1bb   :  { %v567_v40 = vadd.f32 %v2017_v7, %v566_v39 }
 0x1bc   :  { %v1492_v42 = vpop.f32.mrf.mxu1  ;;  %v1643_v43 = vpop.eup %1642 }
 0x1bd   :  { %v578_v44 = vadd.f32 %v1492_v42, %v2017_v7  ;;  %1656 = vtanh.f32 %v567_v40 }
 0x1be   :  { %v1645_v45 = vpop.eup %1644  ;;  %v569_v47 = vpop.f32.mrf.mxu1 }
 0x1bf   :  { %v1647_v48 = vpop.eup %1646  ;;  %v570_v49 = vadd.f32 %v2017_v7, %v569_v47  ;;  %v679_v50 = vpack.c.bf16 %v1645_v45, %v1641_v41  ;;  %1658 = vtanh.f32 %v578_v44 }
 0x1c0   :  { %v1495_v51 = vpop.f32.mrf.mxu1  ;;  %v680_v52 = vpack.c.bf16 %v1643_v43, %v1647_v48 }
 0x1c1   :  { %1660 = vtanh.f32 %v570_v49  ;;  %1517 = vmatprep.mubr.msk.bf16.mxu0 %vm435_vm1, %v679_v50  ;;  %v591_v60 = vadd.f32 %v1495_v51, %v2017_v7 }
 0x1c2   :  { %1662 = vtanh.f32 %v575_v46  ;;  %v582_v53 = vpop.f32.mrf.mxu1  ;;  %1518 = vmatmul.mubr.msk.bf16.gmra.mxu0 %vm435_vm1, %v680_v52  ;;  %v1649_v55 = vpop.eup %1648 }
 0x1c3   :  { %v583_v54 = vadd.f32 %v2017_v7, %v582_v53 }
 0x1c4   :  { %v1496_v56 = vpop.f32.mrf.mxu1  ;;  %v1651_v57 = vpop.eup %1650 }
 0x1c5   :  { %v594_v58 = vadd.f32 %v1496_v56, %v2017_v7  ;;  %1664 = vtanh.f32 %v583_v54  ;;  %v2070_v56 = vld [vmem:[%s2558_s6] ss:$0 sm:$0xff] }
 0x1c6   :  { %v1653_v59 = vpop.eup %1652  ;;  %v585_v61 = vpop.f32.mrf.mxu1 }
 0x1c7   :  { %v1655_v62 = vpop.eup %1654  ;;  %v586_v63 = vadd.f32 %v2017_v7, %v585_v61  ;;  %v681_v0 = vpack.c.bf16 %v1653_v59, %v1649_v55  ;;  %1666 = vtanh.f32 %v594_v58 }
 0x1c8   :  { %v1499_v1 = vpop.f32.mrf.mxu1  ;;  %v682_v2 = vpack.c.bf16 %v1651_v57, %v1655_v62 }
 0x1c9   :  { %1668 = vtanh.f32 %v586_v63  ;;  %1521 = vmatprep.mubr.msk.bf16.mxu0 %vm435_vm1, %v681_v0  ;;  %v607_v10 = vadd.f32 %v1499_v1, %v2017_v7 }
 0x1ca   :  { %1670 = vtanh.f32 %v591_v60  ;;  %v598_v21 = vpop.f32.mrf.mxu1  ;;  %1522 = vmatmul.mubr.msk.bf16.gmra.mxu0 %vm435_vm1, %v682_v2  ;;  %v1657_v4 = vpop.eup %1656 }
 0x1cb   :  { %v599_v3 = vadd.f32 %v2017_v7, %v598_v21 }
 0x1cc   :  { %v1500_v5 = vpop.f32.mrf.mxu1  ;;  %v1659_v6 = vpop.eup %1658 }
 0x1cd   :  { %v610_v8 = vadd.f32 %v1500_v5, %v2017_v7  ;;  %1672 = vtanh.f32 %v599_v3 }
 0x1ce   :  { %v1661_v9 = vpop.eup %1660  ;;  %v601_v11 = vpop.f32.mrf.mxu1 }
 0x1cf   :  { %v1663_v12 = vpop.eup %1662  ;;  %v602_v13 = vadd.f32 %v2017_v7, %v601_v11  ;;  %v683_v14 = vpack.c.bf16 %v1661_v9, %v1657_v4  ;;  %1674 = vtanh.f32 %v610_v8 }
 0x1d0   :  { %v1503_v15 = vpop.f32.mrf.mxu1  ;;  %v684_v16 = vpack.c.bf16 %v1659_v6, %v1663_v12 }
 0x1d1   :  { %1676 = vtanh.f32 %v602_v13  ;;  %1525 = vmatprep.mubr.msk.bf16.mxu0 %vm435_vm1, %v683_v14  ;;  %v623_v25 = vadd.f32 %v1503_v15, %v2017_v7 }
 0x1d2   :  { %1678 = vtanh.f32 %v607_v10  ;;  %v614_v17 = vpop.f32.mrf.mxu1  ;;  %1526 = vmatmul.mubr.msk.bf16.gmra.mxu0 %vm435_vm1, %v684_v16  ;;  %v1665_v19 = vpop.eup %1664 }
 0x1d3   :  { %v615_v18 = vadd.f32 %v2017_v7, %v614_v17 }
 0x1d4   :  { %v1504_v20 = vpop.f32.mrf.mxu1  ;;  %v1667_v22 = vpop.eup %1666 }
 0x1d5   :  { %v626_v23 = vadd.f32 %v1504_v20, %v2017_v7  ;;  %1680 = vtanh.f32 %v615_v18 }
 0x1d6   :  { %v1669_v24 = vpop.eup %1668  ;;  %v617_v26 = vpop.f32.mrf.mxu1 }
 0x1d7   :  { %v1671_v27 = vpop.eup %1670  ;;  %v618_v28 = vadd.f32 %v2017_v7, %v617_v26  ;;  %v685_v29 = vpack.c.bf16 %v1669_v24, %v1665_v19  ;;  %1682 = vtanh.f32 %v626_v23 }
 0x1d8   :  { %v1507_v30 = vpop.f32.mrf.mxu1  ;;  %v686_v31 = vpack.c.bf16 %v1667_v22, %v1671_v27 }
 0x1d9   :  { %1684 = vtanh.f32 %v618_v28  ;;  %1529 = vmatprep.mubr.msk.bf16.mxu0 %vm435_vm1, %v685_v29  ;;  %v639_v39 = vadd.f32 %v1507_v30, %v2017_v7 }
 0x1da   :  { %1686 = vtanh.f32 %v623_v25  ;;  %v630_v32 = vpop.f32.mrf.mxu1  ;;  %1530 = vmatmul.mubr.msk.bf16.gmra.mxu0 %vm435_vm1, %v686_v31  ;;  %v1673_v34 = vpop.eup %1672 }
 0x1db   :  { %v631_v33 = vadd.f32 %v2017_v7, %v630_v32 }
 0x1dc   :  { %v1508_v35 = vpop.f32.mrf.mxu1  ;;  %v1675_v36 = vpop.eup %1674 }
 0x1dd   :  { %v642_v37 = vadd.f32 %v1508_v35, %v2017_v7  ;;  %1688 = vtanh.f32 %v631_v33 }
 0x1de   :  { %v1677_v38 = vpop.eup %1676  ;;  %v633_v40 = vpop.f32.mrf.mxu1 }
 0x1df   :  { %v1679_v41 = vpop.eup %1678  ;;  %v634_v42 = vadd.f32 %v2017_v7, %v633_v40  ;;  %v687_v43 = vpack.c.bf16 %v1677_v38, %v1673_v34  ;;  %1690 = vtanh.f32 %v642_v37 }
 0x1e0   :  { %v688_v44 = vpack.c.bf16 %v1675_v36, %v1679_v41 }
 0x1e1   :  { %1692 = vtanh.f32 %v634_v42  ;;  %1533 = vmatprep.mubr.msk.bf16.mxu0 %vm435_vm1, %v687_v43 }
 0x1e2   :  { %1694 = vtanh.f32 %v639_v39  ;;  %1534 = vmatmul.mubr.msk.bf16.gmra.mxu0 %vm435_vm1, %v688_v44  ;;  %v1681_v45 = vpop.eup %1680 }
 0x1e4   :  { %v1683_v46 = vpop.eup %1682 }
 0x1e6   :  { %v1685_v47 = vpop.eup %1684 }
 0x1e7   :  { %v1687_v48 = vpop.eup %1686  ;;  %v689_v49 = vpack.c.bf16 %v1685_v47, %v1681_v45 }
 0x1e8   :  { %v690_v50 = vpack.c.bf16 %v1683_v46, %v1687_v48 }
 0x1e9   :  { %1537 = vmatprep.mubr.msk.bf16.mxu0 %vm435_vm1, %v689_v49 }
 0x1ea   :  { %1538 = vmatmul.mubr.msk.bf16.gmra.mxu0 %vm435_vm1, %v690_v50  ;;  %v1689_v7 = vpop.eup %1688 }
 0x1ec   :  { %v1691_v51 = vpop.eup %1690 }
 0x1ee   :  { %v1693_v52 = vpop.eup %1692 }
 0x1ef   :  { %v1695_v53 = vpop.eup %1694  ;;  %v691_v54 = vpack.c.bf16 %v1693_v52, %v1689_v7 }
 0x1f0   :  { %v692_v55 = vpack.c.bf16 %v1691_v51, %v1695_v53 }
 0x1f1   :  { %1541 = vmatprep.mubr.msk.bf16.mxu0 %vm435_vm1, %v691_v54 }
 0x1f2   :  { %1542 = vmatmul.mubr.msk.bf16.gmra.mxu0 %vm435_vm1, %v692_v55 }
 0x27a   :  { %v1515_v57 = vpop.f32.mrf.mxu0 }
 0x27b   :  { %v2073_v58 = vadd.f32 %v1515_v57, %v2070_v56 }
 0x27c   :  { %v798_v59 = vpop.f32.mrf.mxu0 }
 0x27d   :  { %v2076_v60 = vadd.f32 %v2070_v56, %v798_v59  ;;  %v932_v61 = vsel %vm925_vm2, %v2073_v58, -inf }
 0x27e   :  { %933 = vmax.xlane.f32.xlu1 %v932_v61  ;;  %v1516_v62 = vpop.f32.mrf.mxu0 }
 0x27f   :  { %v2081_v63 = vadd.f32 %v1516_v62, %v2070_v56  ;;  %v926_v0 = vsel %vm925_vm2, %v2076_v60, -inf }
 0x280   :  { %v801_v1 = vpop.f32.mrf.mxu0  ;;  %927 = vmax.xlane.f32.xlu0 %v926_v0 }
 0x281   :  { %v2086_v2 = vadd.f32 %v2070_v56, %v801_v1  ;;  %v935_v21 = vsel %vm925_vm2, %v2081_v63, -inf }
 0x282   :  { %936 = vmax.xlane.f32.xlu1 %v935_v21  ;;  %v1519_v3 = vpop.f32.mrf.mxu0 }
 0x283   :  { %v2091_v4 = vadd.f32 %v1519_v3, %v2070_v56  ;;  %v929_v5 = vsel %vm925_vm2, %v2086_v2, -inf }
 0x284   :  { %v814_v6 = vpop.f32.mrf.mxu0  ;;  %930 = vmax.xlane.f32.xlu0 %v929_v5 }
 0x285   :  { %v2096_v9 = vadd.f32 %v2070_v56, %v814_v6  ;;  %v944_v11 = vsel %vm925_vm2, %v2091_v4, -inf }
 0x286   :  { %v1520_v8 = vpop.f32.mrf.mxu0 }
 0x287   :  { %v2099_v10 = vadd.f32 %v1520_v8, %v2070_v56  ;;  %v938_v17 = vsel %vm925_vm2, %v2096_v9, -inf }
 0x288   :  { %v817_v12 = vpop.f32.mrf.mxu0  ;;  %945 = vmax.xlane.f32.xlu0 %v944_v11 }
 0x289   :  { %v2104_v13 = vadd.f32 %v2070_v56, %v817_v12  ;;  %v947_v14 = vsel %vm925_vm2, %v2099_v10, -inf }
 0x28a   :  { %948 = vmax.xlane.f32.xlu1 %v947_v14  ;;  %v1523_v15 = vpop.f32.mrf.mxu0 }
 0x28b   :  { %v2109_v16 = vadd.f32 %v1523_v15, %v2070_v56  ;;  %v941_v19 = vsel %vm925_vm2, %v2104_v13, -inf }
 0x28c   :  { %v830_v18 = vpop.f32.mrf.mxu0  ;;  %939 = vmax.xlane.f32.xlu0 %v938_v17 }
 0x28d   :  { %v2116_v22 = vadd.f32 %v2070_v56, %v830_v18  ;;  %v956_v24 = vsel %vm925_vm2, %v2109_v16, -inf }
 0x28e   :  { %v1524_v20 = vpop.f32.mrf.mxu0  ;;  %942 = vmax.xlane.f32.xlu1 %v941_v19 }
 0x28f   :  { %v2119_v23 = vadd.f32 %v1524_v20, %v2070_v56  ;;  %v950_v30 = vsel %vm925_vm2, %v2116_v22, -inf }
 0x290   :  { %v833_v25 = vpop.f32.mrf.mxu0  ;;  %957 = vmax.xlane.f32.xlu0 %v956_v24 }
 0x291   :  { %v2124_v26 = vadd.f32 %v2070_v56, %v833_v25  ;;  %v959_v27 = vsel %vm925_vm2, %v2119_v23, -inf }
 0x292   :  { %v1527_v28 = vpop.f32.mrf.mxu0  ;;  %960 = vmax.xlane.f32.xlu1 %v959_v27 }
 0x293   :  { %v2129_v29 = vadd.f32 %v1527_v28, %v2070_v56  ;;  %v953_v32 = vsel %vm925_vm2, %v2124_v26, -inf }
 0x294   :  { %v846_v31 = vpop.f32.mrf.mxu0  ;;  %951 = vmax.xlane.f32.xlu0 %v950_v30 }
 0x295   :  { %v2136_v34 = vadd.f32 %v2070_v56, %v846_v31  ;;  %v968_v36 = vsel %vm925_vm2, %v2129_v29, -inf }
 0x296   :  { %v1528_v33 = vpop.f32.mrf.mxu0  ;;  %954 = vmax.xlane.f32.xlu1 %v953_v32 }
 0x297   :  { %v2139_v35 = vadd.f32 %v1528_v33, %v2070_v56  ;;  %v962_v42 = vsel %vm925_vm2, %v2136_v34, -inf }
 0x298   :  { %v849_v37 = vpop.f32.mrf.mxu0  ;;  %969 = vmax.xlane.f32.xlu0 %v968_v36 }
 0x299   :  { %v2144_v38 = vadd.f32 %v2070_v56, %v849_v37  ;;  %v971_v39 = vsel %vm925_vm2, %v2139_v35, -inf }
 0x29a   :  { %v1531_v40 = vpop.f32.mrf.mxu0  ;;  %972 = vmax.xlane.f32.xlu1 %v971_v39 }
 0x29b   :  { %v2149_v41 = vadd.f32 %v1531_v40, %v2070_v56  ;;  %v965_v44 = vsel %vm925_vm2, %v2144_v38, -inf }
 0x29c   :  { %v862_v43 = vpop.f32.mrf.mxu0  ;;  %963 = vmax.xlane.f32.xlu0 %v962_v42 }
 0x29d   :  { %v2156_v46 = vadd.f32 %v2070_v56, %v862_v43  ;;  %v980_v48 = vsel %vm925_vm2, %v2149_v41, -inf }
 0x29e   :  { %v1532_v45 = vpop.f32.mrf.mxu0  ;;  %966 = vmax.xlane.f32.xlu1 %v965_v44 }
 0x29f   :  { %v2159_v47 = vadd.f32 %v1532_v45, %v2070_v56  ;;  %v974_v53 = vsel %vm925_vm2, %v2156_v46, -inf }
 0x2a0   :  { %v865_v49 = vpop.f32.mrf.mxu0  ;;  %981 = vmax.xlane.f32.xlu0 %v980_v48 }
 0x2a1   :  { %v2164_v50 = vadd.f32 %v2070_v56, %v865_v49  ;;  %v983_v7 = vsel %vm925_vm2, %v2159_v47, -inf }
 0x2a2   :  { %v1535_v51 = vpop.f32.mrf.mxu0  ;;  %984 = vmax.xlane.f32.xlu1 %v983_v7 }
 0x2a3   :  { %v2169_v52 = vadd.f32 %v1535_v51, %v2070_v56  ;;  %v977_v55 = vsel %vm925_vm2, %v2164_v50, -inf }
 0x2a4   :  { %v878_v54 = vpop.f32.mrf.mxu0  ;;  %975 = vmax.xlane.f32.xlu0 %v974_v53 }
 0x2a5   :  { %v2176_v59 = vadd.f32 %v2070_v56, %v878_v54  ;;  %v992_v62 = vsel %vm925_vm2, %v2169_v52, -inf }
 0x2a6   :  { %v1536_v57 = vpop.f32.mrf.mxu0  ;;  %978 = vmax.xlane.f32.xlu1 %v977_v55 }
 0x2a7   :  { %v2179_v61 = vadd.f32 %v1536_v57, %v2070_v56  ;;  %v986_v6 = vsel %vm925_vm2, %v2176_v59, -inf }
 0x2a8   :  { %v881_v0 = vpop.f32.mrf.mxu0  ;;  %993 = vmax.xlane.f32.xlu0 %v992_v62 }
 0x2a9   :  { %v2184_v1 = vadd.f32 %v2070_v56, %v881_v0  ;;  %v995_v21 = vsel %vm925_vm2, %v2179_v61, -inf }
 0x2aa   :  { %v1539_v3 = vpop.f32.mrf.mxu0  ;;  %996 = vmax.xlane.f32.xlu1 %v995_v21 }
 0x2ab   :  { %v2189_v5 = vadd.f32 %v1539_v3, %v2070_v56  ;;  %v989_v11 = vsel %vm925_vm2, %v2184_v1, -inf }
 0x2ac   :  { %v894_v8 = vpop.f32.mrf.mxu0  ;;  %987 = vmax.xlane.f32.xlu0 %v986_v6 }
 0x2ad   :  { %v2196_v14 = vadd.f32 %v2070_v56, %v894_v8  ;;  %v1004_v17 = vsel %vm925_vm2, %v2189_v5, -inf }
 0x2ae   :  { %v1540_v12 = vpop.f32.mrf.mxu0  ;;  %990 = vmax.xlane.f32.xlu1 %v989_v11 }
 0x2af   :  { %v2199_v15 = vadd.f32 %v1540_v12, %v2070_v56  ;;  %v998_v25 = vsel %vm925_vm2, %v2196_v14, -inf }
 0x2b0   :  { %v897_v18 = vpop.f32.mrf.mxu0  ;;  %1005 = vmax.xlane.f32.xlu0 %v1004_v17 }
 0x2b1   :  { %v2204_v19 = vadd.f32 %v2070_v56, %v897_v18  ;;  %v1007_v20 = vsel %vm925_vm2, %v2199_v15, -inf }
 0x2b2   :  { %v1543_v24 = vpop.f32.mrf.mxu0  ;;  %1008 = vmax.xlane.f32.xlu1 %v1007_v20 }
 0x2b3   :  { %v1001_v30 = vsel %vm925_vm2, %v2204_v19, -inf  ;;  %v2216_v32 = vadd.f32 %v1543_v24, %v2070_v56 }
 0x2b4   :  { %v910_v27 = vpop.f32.mrf.mxu0  ;;  %999 = vmax.xlane.f32.xlu0 %v998_v25 }
 0x2b5   :  { %v2211_v28 = vadd.f32 %v2070_v56, %v910_v27  ;;  %v1016_v42 = vsel %vm925_vm2, %v2216_v32, -inf }
 0x2b6   :  { %v1544_v31 = vpop.f32.mrf.mxu0  ;;  %1002 = vmax.xlane.f32.xlu1 %v1001_v30 }
 0x2b7   :  { %v1010_v33 = vsel %vm925_vm2, %v2211_v28, -inf  ;;  %v2224_v39 = vadd.f32 %v1544_v31, %v2070_v56 }
 0x2b8   :  { %v913_v36 = vpop.f32.mrf.mxu0  ;;  %1011 = vmax.xlane.f32.xlu0 %v1010_v33 }
 0x2b9   :  { %v2221_v37 = vadd.f32 %v2070_v56, %v913_v36  ;;  %v1019_v43 = vsel %vm925_vm2, %v2224_v39, -inf }
 0x2bb   :  { %v1013_v40 = vsel %vm925_vm2, %v2221_v37, -inf }
 0x2bc   :  { %1014 = vmax.xlane.f32.xlu1 %v1013_v40  ;;  %1017 = vmax.xlane.f32.xlu0 %v1016_v42 }
 0x2c0   :  { %1020 = vmax.xlane.f32.xlu1 %v1019_v43 }
 0x307   :  { %v934_v44 = vpop.xlane.xlu1 %933 }
 0x308   :  { %v1024_v45 = vsub.f32 %v2073_v58, %v934_v44 }
 0x309   :  { %v928_v48 = vpop.xlane.xlu0 %927 }
 0x30a   :  { %v1058_v49 = vmul.f32 1.442695, %v1024_v45  ;;  %v1022_v56 = vsub.f32 %v2076_v60, %v928_v48 }
 0x30b   :  { %v937_v7 = vpop.xlane.xlu1 %936 }
 0x30c   :  { %1696 = vpow2.f32 %v1058_v49  ;;  %v1054_v51 = vmul.f32 1.442695, %v1022_v56  ;;  %v1025_v53 = vsub.f32 %v2081_v63, %v937_v7 }
 0x30d   :  { %v931_v54 = vpop.xlane.xlu0 %930 }
 0x30e   :  { %1698 = vpow2.f32 %v1054_v51  ;;  %v1060_v55 = vmul.f32 1.442695, %v1025_v53  ;;  %v1023_v57 = vsub.f32 %v2086_v2, %v931_v54 }
 0x310   :  { %1700 = vpow2.f32 %v1060_v55  ;;  %v1056_v62 = vmul.f32 1.442695, %v1023_v57 }
 0x311   :  { %v946_v0 = vpop.xlane.xlu0 %945 }
 0x312   :  { %1702 = vpow2.f32 %v1056_v62  ;;  %v1028_v58 = vsub.f32 %v2091_v4, %v946_v0 }
 0x313   :  { %v949_v21 = vpop.xlane.xlu1 %948 }
 0x314   :  { %v1066_v3 = vmul.f32 1.442695, %v1028_v58  ;;  %v1029_v60 = vsub.f32 %v2099_v10, %v949_v21 }
 0x315   :  { %v940_v6 = vpop.xlane.xlu0 %939 }
 0x316   :  { %1704 = vpow2.f32 %v1066_v3  ;;  %v1068_v8 = vmul.f32 1.442695, %v1029_v60  ;;  %v1026_v63 = vsub.f32 %v2096_v9, %v940_v6 }
 0x317   :  { %v943_v11 = vpop.xlane.xlu1 %942 }
 0x318   :  { %1706 = vpow2.f32 %v1068_v8  ;;  %v1062_v12 = vmul.f32 1.442695, %v1026_v63  ;;  %v1027_v2 = vsub.f32 %v2104_v13, %v943_v11 }
 0x319   :  { %v2240_v17 = vpop.eup %1696  ;;  %v958_v18 = vpop.xlane.xlu0 %957 }
 0x31a   :  { %1708 = vpow2.f32 %v1062_v12  ;;  %v1064_v20 = vmul.f32 1.442695, %v1027_v2  ;;  %v1032_v4 = vsub.f32 %v2109_v16, %v958_v18  ;;  %v1124_v10 = vsel %vm925_vm2, %v2240_v17, 0.0 }
 0x31b   :  { %v2245_v24 = vpop.eup %1698  ;;  %v961_v25 = vpop.xlane.xlu1 %960  ;;  %1125 = vadd.xlane.f32.xlu0 %v1124_v10 }
 0x31c   :  { %1710 = vpow2.f32 %v1064_v20  ;;  %v1074_v9 = vmul.f32 1.442695, %v1032_v4  ;;  %v1033_v27 = vsub.f32 %v2119_v23, %v961_v25  ;;  %v1118_v31 = vsel %vm925_vm2, %v2245_v24, 0.0 }
 0x31d   :  { %v2248_v30 = vpop.eup %1700  ;;  %v952_v13 = vpop.xlane.xlu0 %951 }
 0x31e   :  { %1712 = vpow2.f32 %v1074_v9  ;;  %v1076_v33 = vmul.f32 1.442695, %v1033_v27  ;;  %v1030_v16 = vsub.f32 %v2116_v22, %v952_v13  ;;  %v1127_v36 = vsel %vm925_vm2, %v2248_v30, 0.0 }
 0x31f   :  { %v2255_v40 = vpop.eup %1702  ;;  %1128 = vadd.xlane.f32.xlu1 %v1127_v36  ;;  %v955_v42 = vpop.xlane.xlu1 %954  ;;  %1119 = vadd.xlane.f32.xlu0 %v1118_v31 }
 0x320   :  { %1714 = vpow2.f32 %v1076_v33  ;;  %v1070_v23 = vmul.f32 1.442695, %v1030_v16  ;;  %v1031_v43 = vsub.f32 %v2124_v26, %v955_v42  ;;  %v1121_v22 = vsel %vm925_vm2, %v2255_v40, 0.0 }
 0x321   :  { %v970_v44 = vpop.xlane.xlu0 %969 }
 0x322   :  { %1716 = vpow2.f32 %v1070_v23  ;;  %v1072_v45 = vmul.f32 1.442695, %v1031_v43  ;;  %v1036_v48 = vsub.f32 %v2129_v29, %v970_v44 }
 0x323   :  { %v2261_v49 = vpop.eup %1704  ;;  %v973_v56 = vpop.xlane.xlu1 %972  ;;  %1122 = vadd.xlane.f32.xlu1 %v1121_v22 }
 0x324   :  { %1718 = vpow2.f32 %v1072_v45  ;;  %v1082_v7 = vmul.f32 1.442695, %v1036_v48  ;;  %v1037_v51 = vsub.f32 %v2139_v35, %v973_v56  ;;  %v1136_v53 = vsel %vm925_vm2, %v2261_v49, 0.0 }
 0x325   :  { %v2266_v26 = vpop.eup %1706  ;;  %1137 = vadd.xlane.f32.xlu0 %v1136_v53  ;;  %v964_v54 = vpop.xlane.xlu0 %963 }
 0x326   :  { %1720 = vpow2.f32 %v1082_v7  ;;  %v1084_v29 = vmul.f32 1.442695, %v1037_v51  ;;  %v1034_v55 = vsub.f32 %v2136_v34, %v964_v54  ;;  %v1139_v57 = vsel %vm925_vm2, %v2266_v26, 0.0 }
 0x327   :  { %v2271_v62 = vpop.eup %1708  ;;  %v967_v0 = vpop.xlane.xlu1 %966  ;;  %1140 = vadd.xlane.f32.xlu1 %v1139_v57 }
 0x328   :  { %1722 = vpow2.f32 %v1084_v29  ;;  %v1078_v35 = vmul.f32 1.442695, %v1034_v55  ;;  %v1035_v58 = vsub.f32 %v2144_v38, %v967_v0  ;;  %v1130_v21 = vsel %vm925_vm2, %v2271_v62, 0.0 }
 0x329   :  { %v2276_v3 = vpop.eup %1710  ;;  %1131 = vadd.xlane.f32.xlu0 %v1130_v21  ;;  %v982_v60 = vpop.xlane.xlu0 %981 }
 0x32a   :  { %1724 = vpow2.f32 %v1078_v35  ;;  %v1080_v34 = vmul.f32 1.442695, %v1035_v58  ;;  %v1040_v6 = vsub.f32 %v2149_v41, %v982_v60  ;;  %v1133_v8 = vsel %vm925_vm2, %v2276_v3, 0.0 }
 0x32b   :  { %v2281_v63 = vpop.eup %1712  ;;  %v985_v11 = vpop.xlane.xlu1 %984  ;;  %1134 = vadd.xlane.f32.xlu1 %v1133_v8 }
 0x32c   :  { %1726 = vpow2.f32 %v1080_v34  ;;  %v1090_v38 = vmul.f32 1.442695, %v1040_v6  ;;  %v1041_v12 = vsub.f32 %v2159_v47, %v985_v11  ;;  %v1148_v2 = vsel %vm925_vm2, %v2281_v63, 0.0 }
 0x32d   :  { %v2286_v18 = vpop.eup %1714  ;;  %1149 = vadd.xlane.f32.xlu0 %v1148_v2  ;;  %v976_v20 = vpop.xlane.xlu0 %975 }
 0x32e   :  { %1728 = vpow2.f32 %v1090_v38  ;;  %v1092_v41 = vmul.f32 1.442695, %v1041_v12  ;;  %v1038_v4 = vsub.f32 %v2156_v46, %v976_v20  ;;  %v1151_v10 = vsel %vm925_vm2, %v2286_v18, 0.0 }
 0x32f   :  { %v2291_v25 = vpop.eup %1716  ;;  %v979_v9 = vpop.xlane.xlu1 %978  ;;  %1152 = vadd.xlane.f32.xlu1 %v1151_v10 }
 0x330   :  { %1730 = vpow2.f32 %v1092_v41  ;;  %v1086_v47 = vmul.f32 1.442695, %v1038_v4  ;;  %v1039_v27 = vsub.f32 %v2164_v50, %v979_v9  ;;  %v1142_v13 = vsel %vm925_vm2, %v2291_v25, 0.0 }
 0x331   :  { %v2296_v31 = vpop.eup %1718  ;;  %1143 = vadd.xlane.f32.xlu0 %v1142_v13  ;;  %v994_v33 = vpop.xlane.xlu0 %993 }
 0x332   :  { %1732 = vpow2.f32 %v1086_v47  ;;  %v1088_v46 = vmul.f32 1.442695, %v1039_v27  ;;  %v1044_v16 = vsub.f32 %v2169_v52, %v994_v33  ;;  %v1145_v36 = vsel %vm925_vm2, %v2296_v31, 0.0 }
 0x333   :  { %v2301_v42 = vpop.eup %1720  ;;  %v997_v23 = vpop.xlane.xlu1 %996  ;;  %1146 = vadd.xlane.f32.xlu1 %v1145_v36 }
 0x334   :  { %1734 = vpow2.f32 %v1088_v46  ;;  %v1098_v50 = vmul.f32 1.442695, %v1044_v16  ;;  %v1045_v43 = vsub.f32 %v2179_v61, %v997_v23  ;;  %v1160_v44 = vsel %vm925_vm2, %v2301_v42, 0.0 }
 0x335   :  { %v2306_v45 = vpop.eup %1722  ;;  %1161 = vadd.xlane.f32.xlu0 %v1160_v44  ;;  %v988_v48 = vpop.xlane.xlu0 %987 }
 0x336   :  { %1736 = vpow2.f32 %v1098_v50  ;;  %v1100_v52 = vmul.f32 1.442695, %v1045_v43  ;;  %v1042_v22 = vsub.f32 %v2176_v59, %v988_v48  ;;  %v1163_v56 = vsel %vm925_vm2, %v2306_v45, 0.0 }
 0x337   :  { %v2311_v7 = vpop.eup %1724  ;;  %v991_v51 = vpop.xlane.xlu1 %990  ;;  %1164 = vadd.xlane.f32.xlu1 %v1163_v56 }
 0x338   :  { %1738 = vpow2.f32 %v1100_v52  ;;  %v1094_v61 = vmul.f32 1.442695, %v1042_v22  ;;  %v1043_v53 = vsub.f32 %v2184_v1, %v991_v51  ;;  %v1154_v54 = vsel %vm925_vm2, %v2311_v7, 0.0 }
 0x339   :  { %v2316_v29 = vpop.eup %1726  ;;  %1155 = vadd.xlane.f32.xlu0 %v1154_v54  ;;  %v1006_v55 = vpop.xlane.xlu0 %1005 }
 0x33a   :  { %1740 = vpow2.f32 %v1094_v61  ;;  %v1096_v59 = vmul.f32 1.442695, %v1043_v53  ;;  %v1048_v57 = vsub.f32 %v2189_v5, %v1006_v55  ;;  %v1157_v0 = vsel %vm925_vm2, %v2316_v29, 0.0 }
 0x33b   :  { %v2321_v35 = vpop.eup %1728  ;;  %v1009_v58 = vpop.xlane.xlu1 %1008  ;;  %1158 = vadd.xlane.f32.xlu1 %v1157_v0 }
 0x33c   :  { %1742 = vpow2.f32 %v1096_v59  ;;  %v1106_v1 = vmul.f32 1.442695, %v1048_v57  ;;  %v1049_v21 = vsub.f32 %v2199_v15, %v1009_v58  ;;  %v1172_v60 = vsel %vm925_vm2, %v2321_v35, 0.0 }
 0x33d   :  { %v2326_v34 = vpop.eup %1730  ;;  %1173 = vadd.xlane.f32.xlu0 %v1172_v60  ;;  %v1000_v6 = vpop.xlane.xlu0 %999 }
 0x33e   :  { %1744 = vpow2.f32 %v1106_v1  ;;  %v1108_v5 = vmul.f32 1.442695, %v1049_v21  ;;  %v1046_v8 = vsub.f32 %v2196_v14, %v1000_v6  ;;  %v1175_v11 = vsel %vm925_vm2, %v2326_v34, 0.0 }
 0x33f   :  { %v2331_v38 = vpop.eup %1732  ;;  %v1003_v12 = vpop.xlane.xlu1 %1002  ;;  %1176 = vadd.xlane.f32.xlu1 %v1175_v11 }
 0x340   :  { %1746 = vpow2.f32 %v1108_v5  ;;  %v1102_v15 = vmul.f32 1.442695, %v1046_v8  ;;  %v1047_v2 = vsub.f32 %v2204_v19, %v1003_v12  ;;  %v1166_v20 = vsel %vm925_vm2, %v2331_v38, 0.0 }
 0x341   :  { %v2336_v41 = vpop.eup %1734  ;;  %1167 = vadd.xlane.f32.xlu0 %v1166_v20  ;;  %v1012_v4 = vpop.xlane.xlu0 %1011 }
 0x342   :  { %1748 = vpow2.f32 %v1102_v15  ;;  %v1104_v14 = vmul.f32 1.442695, %v1047_v2  ;;  %v1050_v10 = vsub.f32 %v2211_v28, %v1012_v4  ;;  %v1169_v9 = vsel %vm925_vm2, %v2336_v41, 0.0 }
 0x343   :  { %v2341_v47 = vpop.eup %1736  ;;  %1170 = vadd.xlane.f32.xlu1 %v1169_v9 }
 0x344   :  { %1750 = vpow2.f32 %v1104_v14  ;;  %v1110_v27 = vmul.f32 1.442695, %v1050_v10  ;;  %v1184_v19 = vsel %vm925_vm2, %v2341_v47, 0.0 }
 0x345   :  { %v2345_v13 = vpop.eup %1738  ;;  %v1015_v33 = vpop.xlane.xlu1 %1014  ;;  %1185 = vadd.xlane.f32.xlu0 %v1184_v19 }
 0x346   :  { %v1018_v46 = vpop.xlane.xlu0 %1017  ;;  %1752 = vpow2.f32 %v1110_v27  ;;  %v1051_v16 = vsub.f32 %v2221_v37, %v1015_v33  ;;  %v1187_v36 = vsel %vm925_vm2, %v2345_v13, 0.0 }
 0x347   :  { %v1052_v28 = vsub.f32 %v2216_v32, %v1018_v46  ;;  %v2351_v23 = vpop.eup %1740  ;;  %1188 = vadd.xlane.f32.xlu1 %v1187_v36 }
 0x348   :  { %v1112_v50 = vmul.f32 1.442695, %v1051_v16  ;;  %v1178_v44 = vsel %vm925_vm2, %v2351_v23, 0.0 }
 0x349   :  { %v1114_v43 = vmul.f32 1.442695, %v1052_v28  ;;  %v2355_v48 = vpop.eup %1742  ;;  %v1021_v52 = vpop.xlane.xlu1 %1020  ;;  %1179 = vadd.xlane.f32.xlu0 %v1178_v44 }
 0x34a   :  { %1754 = vpow2.f32 %v1112_v50  ;;  %v1053_v37 = vsub.f32 %v2224_v39, %v1021_v52  ;;  %v1181_v32 = vsel %vm925_vm2, %v2355_v48, 0.0 }
 0x34b   :  { %v2360_v22 = vpop.eup %1744  ;;  %1756 = vpow2.f32 %v1114_v43  ;;  %1182 = vadd.xlane.f32.xlu1 %v1181_v32 }
 0x34c   :  { %v1116_v56 = vmul.f32 1.442695, %v1053_v37  ;;  %v1196_v51 = vsel %vm925_vm2, %v2360_v22, 0.0 }
 0x34d   :  { %v2364_v61 = vpop.eup %1746  ;;  %1197 = vadd.xlane.f32.xlu0 %v1196_v51 }
 0x34e   :  { %1758 = vpow2.f32 %v1116_v56  ;;  %v1199_v53 = vsel %vm925_vm2, %v2364_v61, 0.0 }
 0x34f   :  { %v2368_v54 = vpop.eup %1748  ;;  %1200 = vadd.xlane.f32.xlu1 %v1199_v53 }
 0x350   :  { %v1190_v39 = vsel %vm925_vm2, %v2368_v54, 0.0 }
 0x351   :  { %v2372_v55 = vpop.eup %1750  ;;  %1191 = vadd.xlane.f32.xlu0 %v1190_v39 }
 0x352   :  { %v1193_v59 = vsel %vm925_vm2, %v2372_v55, 0.0 }
 0x353   :  { %v2376_v57 = vpop.eup %1752  ;;  %1194 = vadd.xlane.f32.xlu1 %v1193_v59 }
 0x354   :  { %v1202_v0 = vsel %vm925_vm2, %v2376_v57, 0.0 }
 0x355   :  { %1203 = vadd.xlane.f32.xlu0 %v1202_v0 }
 0x357   :  { %v2380_v58 = vpop.eup %1754 }
 0x358   :  { %v2382_v1 = vpop.eup %1756  ;;  %v1205_v21 = vsel %vm925_vm2, %v2380_v58, 0.0 }
 0x359   :  { %1206 = vadd.xlane.f32.xlu1 %v1205_v21  ;;  %v1208_v60 = vsel %vm925_vm2, %v2382_v1, 0.0 }
 0x35a   :  { %1209 = vadd.xlane.f32.xlu0 %v1208_v60 }
 0x35b   :  { %v2388_v6 = vpop.eup %1758 }
 0x35c   :  { %v1211_v5 = vsel %vm925_vm2, %v2388_v6, 0.0 }
 0x35d   :  { %1212 = vadd.xlane.f32.xlu1 %v1211_v5 }
 0x3a4   :  { %v1126_v8 = vpop.xlane.xlu0 %1125 }
 0x3a5   :  { %1760 = vrcp.f32 %v1126_v8 }
 0x3a8   :  { %v1129_v11 = vpop.xlane.xlu1 %1128  ;;  %v1120_v12 = vpop.xlane.xlu0 %1119 }
 0x3a9   :  { %1762 = vrcp.f32 %v1129_v11 }
 0x3aa   :  { %1764 = vrcp.f32 %v1120_v12 }
 0x3ac   :  { %v1123_v15 = vpop.xlane.xlu1 %1122 }
 0x3ad   :  { %1766 = vrcp.f32 %v1123_v15 }
 0x3ae   :  { %v1138_v2 = vpop.xlane.xlu0 %1137 }
 0x3af   :  { %1768 = vrcp.f32 %v1138_v2 }
 0x3b0   :  { %v1141_v20 = vpop.xlane.xlu1 %1140 }
 0x3b1   :  { %1770 = vrcp.f32 %v1141_v20 }
 0x3b2   :  { %v1761_v4 = vpop.eup %1760  ;;  %v1132_v14 = vpop.xlane.xlu0 %1131 }
 0x3b3   :  { %v1219_v10 = vmul.f32 %v1761_v4, %v2240_v17  ;;  %1772 = vrcp.f32 %v1132_v14 }
 0x3b4   :  { %v1135_v9 = vpop.xlane.xlu1 %1134 }
 0x3b5   :  { %1280 = vst.msk [vmem:[%s2559_s7 + $0x10] sm:$0xff] %vm925_vm2, %v1219_v10  ;;  %1774 = vrcp.f32 %v1135_v9 }
 0x3b6   :  { %v1763_v27 = vpop.eup %1762  ;;  %v1150_v19 = vpop.xlane.xlu0 %1149 }
 0x3b7   :  { %v1765_v33 = vpop.eup %1764  ;;  %v1221_v46 = vmul.f32 %v1763_v27, %v2248_v30  ;;  %1776 = vrcp.f32 %v1150_v19 }
 0x3b8   :  { %v1215_v16 = vmul.f32 %v1765_v33, %v2245_v24  ;;  %v1153_v28 = vpop.xlane.xlu1 %1152 }
 0x3b9   :  { %1281 = vst.msk [vmem:[%s2559_s7 + $0x18] sm:$0xff] %vm925_vm2, %v1221_v46  ;;  %1778 = vrcp.f32 %v1153_v28 }
 0x3ba   :  { %v1767_v17 = vpop.eup %1766  ;;  %1278 = vst.msk [vmem:[%s2559_s7] sm:$0xff] %vm925_vm2, %v1215_v16  ;;  %v1144_v36 = vpop.xlane.xlu0 %1143 }
 0x3bb   :  { %v1217_v50 = vmul.f32 %v1767_v17, %v2255_v40  ;;  %1780 = vrcp.f32 %v1144_v36 }
 0x3bc   :  { %v1769_v30 = vpop.eup %1768  ;;  %v1147_v43 = vpop.xlane.xlu1 %1146 }
 0x3bd   :  { %1279 = vst.msk [vmem:[%s2559_s7 + $0x8] sm:$0xff] %vm925_vm2, %v1217_v50  ;;  %v1227_v24 = vmul.f32 %v1769_v30, %v2261_v49  ;;  %1782 = vrcp.f32 %v1147_v43 }
 0x3be   :  { %v1771_v44 = vpop.eup %1770  ;;  %v1162_v52 = vpop.xlane.xlu0 %1161 }
 0x3bf   :  { %1284 = vst.msk [vmem:[%s2559_s7 + $0x30] sm:$0xff] %vm925_vm2, %v1227_v24  ;;  %v1229_v40 = vmul.f32 %v1771_v44, %v2266_v26  ;;  %1784 = vrcp.f32 %v1162_v52 }
 0x3c0   :  { %v1773_v37 = vpop.eup %1772  ;;  %v1165_v32 = vpop.xlane.xlu1 %1164 }
 0x3c1   :  { %1285 = vst.msk [vmem:[%s2559_s7 + $0x38] sm:$0xff] %vm925_vm2, %v1229_v40  ;;  %v1223_v49 = vmul.f32 %v1773_v37, %v2271_v62  ;;  %1786 = vrcp.f32 %v1165_v32 }
 0x3c2   :  { %v1775_v56 = vpop.eup %1774  ;;  %v1156_v51 = vpop.xlane.xlu0 %1155 }
 0x3c3   :  { %1282 = vst.msk [vmem:[%s2559_s7 + $0x20] sm:$0xff] %vm925_vm2, %v1223_v49  ;;  %v1225_v26 = vmul.f32 %v1775_v56, %v2276_v3  ;;  %1788 = vrcp.f32 %v1156_v51 }
 0x3c4   :  { %v1777_v53 = vpop.eup %1776  ;;  %v1159_v39 = vpop.xlane.xlu1 %1158 }
 0x3c5   :  { %1283 = vst.msk [vmem:[%s2559_s7 + $0x28] sm:$0xff] %vm925_vm2, %v1225_v26  ;;  %v1235_v62 = vmul.f32 %v1777_v53, %v2281_v63  ;;  %1790 = vrcp.f32 %v1159_v39 }
 0x3c6   :  { %v1779_v59 = vpop.eup %1778  ;;  %v1174_v0 = vpop.xlane.xlu0 %1173 }
 0x3c7   :  { %1288 = vst.msk [vmem:[%s2559_s7 + $0x50] sm:$0xff] %vm925_vm2, %v1235_v62  ;;  %v1237_v3 = vmul.f32 %v1779_v59, %v2286_v18  ;;  %1792 = vrcp.f32 %v1174_v0 }
 0x3c8   :  { %v1781_v21 = vpop.eup %1780  ;;  %v1177_v60 = vpop.xlane.xlu1 %1176 }
 0x3c9   :  { %1289 = vst.msk [vmem:[%s2559_s7 + $0x58] sm:$0xff] %vm925_vm2, %v1237_v3  ;;  %v1231_v63 = vmul.f32 %v1781_v21, %v2291_v25  ;;  %1794 = vrcp.f32 %v1177_v60 }
 0x3ca   :  { %v1783_v5 = vpop.eup %1782  ;;  %v1168_v8 = vpop.xlane.xlu0 %1167 }
 0x3cb   :  { %1286 = vst.msk [vmem:[%s2559_s7 + $0x40] sm:$0xff] %vm925_vm2, %v1231_v63  ;;  %v1233_v18 = vmul.f32 %v1783_v5, %v2296_v31  ;;  %1796 = vrcp.f32 %v1168_v8 }
 0x3cc   :  { %v1785_v11 = vpop.eup %1784  ;;  %v1171_v12 = vpop.xlane.xlu1 %1170 }
 0x3cd   :  { %1287 = vst.msk [vmem:[%s2559_s7 + $0x48] sm:$0xff] %vm925_vm2, %v1233_v18  ;;  %v1243_v25 = vmul.f32 %v1785_v11, %v2301_v42  ;;  %1798 = vrcp.f32 %v1171_v12 }
 0x3ce   :  { %v1787_v15 = vpop.eup %1786  ;;  %v1186_v2 = vpop.xlane.xlu0 %1185 }
 0x3cf   :  { %1292 = vst.msk [vmem:[%s2559_s7 + $0x70] sm:$0xff] %vm925_vm2, %v1243_v25  ;;  %v1245_v31 = vmul.f32 %v1787_v15, %v2306_v45  ;;  %1800 = vrcp.f32 %v1186_v2 }
 0x3d0   :  { %v1789_v20 = vpop.eup %1788  ;;  %v1189_v4 = vpop.xlane.xlu1 %1188 }
 0x3d1   :  { %1293 = vst.msk [vmem:[%s2559_s7 + $0x78] sm:$0xff] %vm925_vm2, %v1245_v31  ;;  %v1239_v42 = vmul.f32 %v1789_v20, %v2311_v7  ;;  %1802 = vrcp.f32 %v1189_v4 }
 0x3d2   :  { %v1791_v14 = vpop.eup %1790  ;;  %v1180_v10 = vpop.xlane.xlu0 %1179 }
 0x3d3   :  { %1290 = vst.msk [vmem:[%s2559_s7 + $0x60] sm:$0xff] %vm925_vm2, %v1239_v42  ;;  %v1241_v45 = vmul.f32 %v1791_v14, %v2316_v29  ;;  %1804 = vrcp.f32 %v1180_v10 }
 0x3d4   :  { %v1793_v9 = vpop.eup %1792  ;;  %v1183_v27 = vpop.xlane.xlu1 %1182 }
 0x3d5   :  { %1291 = vst.msk [vmem:[%s2559_s7 + $0x68] sm:$0xff] %vm925_vm2, %v1241_v45  ;;  %v1251_v7 = vmul.f32 %v1793_v9, %v2321_v35  ;;  %1806 = vrcp.f32 %v1183_v27 }
 0x3d6   :  { %v1795_v19 = vpop.eup %1794  ;;  %v1198_v33 = vpop.xlane.xlu0 %1197 }
 0x3d7   :  { %1296 = vst.msk [vmem:[%s2559_s7 + $0x90] sm:$0xff] %vm925_vm2, %v1251_v7  ;;  %v1253_v29 = vmul.f32 %v1795_v19, %v2326_v34  ;;  %1808 = vrcp.f32 %v1198_v33 }
 0x3d8   :  { %v1797_v46 = vpop.eup %1796  ;;  %v1201_v16 = vpop.xlane.xlu1 %1200 }
 0x3d9   :  { %1297 = vst.msk [vmem:[%s2559_s7 + $0x98] sm:$0xff] %vm925_vm2, %v1253_v29  ;;  %v1247_v35 = vmul.f32 %v1797_v46, %v2331_v38  ;;  %1810 = vrcp.f32 %v1201_v16 }
 0x3da   :  { %v1799_v28 = vpop.eup %1798  ;;  %v1192_v17 = vpop.xlane.xlu0 %1191 }
 0x3db   :  { %1294 = vst.msk [vmem:[%s2559_s7 + $0x80] sm:$0xff] %vm925_vm2, %v1247_v35  ;;  %v1249_v34 = vmul.f32 %v1799_v28, %v2336_v41  ;;  %1812 = vrcp.f32 %v1192_v17 }
 0x3dc   :  { %v1801_v36 = vpop.eup %1800  ;;  %v1195_v50 = vpop.xlane.xlu1 %1194 }
 0x3dd   :  { %1295 = vst.msk [vmem:[%s2559_s7 + $0x88] sm:$0xff] %vm925_vm2, %v1249_v34  ;;  %v1259_v38 = vmul.f32 %v1801_v36, %v2341_v47  ;;  %1814 = vrcp.f32 %v1195_v50 }
 0x3de   :  { %v1803_v30 = vpop.eup %1802  ;;  %v1204_v43 = vpop.xlane.xlu0 %1203 }
 0x3df   :  { %1300 = vst.msk [vmem:[%s2559_s7 + $0xb0] sm:$0xff] %vm925_vm2, %v1259_v38  ;;  %v1261_v41 = vmul.f32 %v1803_v30, %v2345_v13  ;;  %1816 = vrcp.f32 %v1204_v43 }
 0x3e0   :  { %v1805_v24 = vpop.eup %1804 }
 0x3e1   :  { %1301 = vst.msk [vmem:[%s2559_s7 + $0xb8] sm:$0xff] %vm925_vm2, %v1261_v41  ;;  %v1255_v44 = vmul.f32 %v1805_v24, %v2351_v23 }
 0x3e2   :  { %v1807_v47 = vpop.eup %1806  ;;  %v1207_v52 = vpop.xlane.xlu1 %1206 }
 0x3e3   :  { %1298 = vst.msk [vmem:[%s2559_s7 + $0xa0] sm:$0xff] %vm925_vm2, %v1255_v44  ;;  %v1257_v40 = vmul.f32 %v1807_v47, %v2355_v48  ;;  %1818 = vrcp.f32 %v1207_v52  ;;  %v1210_v13 = vpop.xlane.xlu0 %1209 }
 0x3e4   :  { %v1809_v37 = vpop.eup %1808  ;;  %1820 = vrcp.f32 %v1210_v13 }
 0x3e5   :  { %1299 = vst.msk [vmem:[%s2559_s7 + $0xa8] sm:$0xff] %vm925_vm2, %v1257_v40  ;;  %v1267_v23 = vmul.f32 %v1809_v37, %v2360_v22 }
 0x3e6   :  { %v1811_v32 = vpop.eup %1810  ;;  %v1213_v49 = vpop.xlane.xlu1 %1212 }
 0x3e7   :  { %1304 = vst.msk [vmem:[%s2559_s7 + $0xd0] sm:$0xff] %vm925_vm2, %v1267_v23  ;;  %v1269_v48 = vmul.f32 %v1811_v32, %v2364_v61  ;;  %1822 = vrcp.f32 %v1213_v49 }
 0x3e8   :  { %v1813_v56 = vpop.eup %1812 }
 0x3e9   :  { %1305 = vst.msk [vmem:[%s2559_s7 + $0xd8] sm:$0xff] %vm925_vm2, %v1269_v48  ;;  %v1263_v51 = vmul.f32 %v1813_v56, %v2368_v54 }
 0x3ea   :  { %v1815_v26 = vpop.eup %1814 }
 0x3eb   :  { %1302 = vst.msk [vmem:[%s2559_s7 + $0xc0] sm:$0xff] %vm925_vm2, %v1263_v51  ;;  %v1265_v22 = vmul.f32 %v1815_v26, %v2372_v55 }
 0x3ec   :  { %v1817_v53 = vpop.eup %1816 }
 0x3ed   :  { %1303 = vst.msk [vmem:[%s2559_s7 + $0xc8] sm:$0xff] %vm925_vm2, %v1265_v22  ;;  %v1271_v61 = vmul.f32 %v1817_v53, %v2376_v57 }
 0x3ef   :  { %1306 = vst.msk [vmem:[%s2559_s7 + $0xe0] sm:$0xff] %vm925_vm2, %v1271_v61 }
 0x3f0   :  { %v1819_v54 = vpop.eup %1818 }
 0x3f1   :  { %v1821_v39 = vpop.eup %1820  ;;  %v1273_v62 = vmul.f32 %v1819_v54, %v2380_v58 }
 0x3f2   :  { %v1275_v59 = vmul.f32 %v1821_v39, %v2382_v1 }
 0x3f3   :  { %1307 = vst.msk [vmem:[%s2559_s7 + $0xe8] sm:$0xff] %vm925_vm2, %v1273_v62 }
 0x3f4   :  { %v1823_v55 = vpop.eup %1822  ;;  %1308 = vst.msk [vmem:[%s2559_s7 + $0xf0] sm:$0xff] %vm925_vm2, %v1275_v59 }
 0x3f5   :  { %v1277_v57 = vmul.f32 %v1823_v55, %v2388_v6 }
 0x3f7   :  { %1309 = vst.msk [vmem:[%s2559_s7 + $0xf8] sm:$0xff] %vm925_vm2, %v1277_v57 }

</bundles_post_ra>
